<compile_context>
chip_gen: v5e
topology: v5e:2x2
jax: 0.10.0
libtpu: 0.0.40
codegen_flags: <defaults>
</compile_context>

<pallas_src>
import functools

import jax
import jax.numpy as jnp
from jax.experimental import pallas as pl
from jax.experimental.pallas import tpu as pltpu

LANE = 128
SUBLANE = 8
ROW_ALIGN = 16            # safe for f32 and bf16 sublane tiling
MAX_BLOCK_ROWS = 2048     # 2048*128*4B = 1 MiB per f32 input tile


def _cdiv(a, b):
    return -(-a // b)


def _round_up(a, b):
    return _cdiv(a, b) * b


def _num_cores():
    """2 TensorCores only on v7x; v5e/v6e are single-TC."""
    try:
        kind = jax.devices()[0].device_kind.lower()
    except Exception:
        return 1
    return 2 if "v7" in kind else 1


def _dice_bce_kernel(x_ref, t_ref, out_ref,
                     inter_acc, denom_acc, bce_acc,
                     *, steps_per_core, total_blocks, block_rows):
    c = pl.program_id(0)
    i = pl.program_id(1)

    @pl.when(i == 0)
    def _():
        inter_acc[...] = jnp.zeros_like(inter_acc)
        denom_acc[...] = jnp.zeros_like(denom_acc)
        bce_acc[...] = jnp.zeros_like(bce_acc)

    blk = c * steps_per_core + i

    # Skip the duplicated (clamped) block that appears when total_blocks does
    # not split evenly across cores; padding inside real blocks is neutral
    # (x = -1e9 -> p = 0, bce = 0), so no per-element mask is needed.
    @pl.when(blk < total_blocks)
    def _():
        x = x_ref[...].astype(jnp.float32)
        t = t_ref[...].astype(jnp.float32)

        # Single-EUP sigmoid.
        p = 0.5 * jnp.tanh(0.5 * x) + 0.5

        # BCE on probabilities, PyTorch-style clamp of each log at -100.
        # log(1 - sigmoid(x)) == log(sigmoid(x)) - x  (one log, no extra exp).
        log_p = jnp.maximum(jnp.log(p), -100.0)
        log_1mp = jnp.clip(log_p - x, -100.0, 0.0)
        bce = -(t * log_p + (1.0 - t) * log_1mp)

        # Reduce the block to one vreg per quantity (VALU adds only), then a
        # single tiny RMW per accumulator.
        nsub = block_rows // SUBLANE
        inter_acc[...] += jnp.sum((p * t).reshape(nsub, SUBLANE, LANE), axis=0)
        denom_acc[...] += jnp.sum((p + t).reshape(nsub, SUBLANE, LANE), axis=0)
        bce_acc[...] += jnp.sum(bce.reshape(nsub, SUBLANE, LANE), axis=0)

    @pl.when(i == pl.num_programs(1) - 1)
    def _():
        inter = jnp.sum(inter_acc[...])
        denom = jnp.sum(denom_acc[...])
        bsum = jnp.sum(bce_acc[...])
        row = jax.lax.broadcasted_iota(jnp.int32, (SUBLANE, LANE), 0)
        vals = jnp.where(row == 0, inter,
                         jnp.where(row == 1, denom,
                                   jnp.where(row == 2, bsum, 0.0)))
        out_ref[...] = vals[None]


def dice_bce_loss(logits, targets, smooth=1.0):
    """Equivalent of DiceBCELoss().forward(logits, targets) with smooth=1."""
    x = logits.reshape(-1)
    t = targets.reshape(-1)
    n = x.shape[0]

    num_cores = _num_cores()

    # Choose the block size, then pad to a whole number of blocks so every
    # DMA stays in bounds and every block is fully valid (padding is neutral:
    # x=-1e9 -> p=0 -> dice and bce contributions are exactly 0).
    rows_raw = _cdiv(n, LANE)
    block_rows = min(MAX_BLOCK_ROWS, _round_up(rows_raw, ROW_ALIGN))
    rows = _round_up(rows_raw, block_rows)
    n_pad = rows * LANE
    if n_pad != n:
        x = jnp.pad(x, (0, n_pad - n), constant_values=-1e9)
        t = jnp.pad(t, (0, n_pad - n), constant_values=0)

    x2 = x.reshape(rows, LANE)
    t2 = t.reshape(rows, LANE)

    total_blocks = rows // block_rows
    steps_per_core = _cdiv(total_blocks, num_cores)
    last_block = total_blocks - 1

    def in_map(c, i):
        # Clamp so the DMA never runs past the array; the duplicated block's
        # compute is skipped in-kernel with pl.when(blk < total_blocks).
        return (jnp.minimum(c * steps_per_core + i, last_block), 0)

    kernel = functools.partial(_dice_bce_kernel,
                               steps_per_core=steps_per_core,
                               total_blocks=total_blocks,
                               block_rows=block_rows)

    out = pl.pallas_call(
        kernel,
        out_shape=jax.ShapeDtypeStruct((num_cores, SUBLANE, LANE), jnp.float32),
        grid_spec=pltpu.PrefetchScalarGridSpec(
            num_scalar_prefetch=0,
            grid=(num_cores, steps_per_core),
            in_specs=[
                pl.BlockSpec((block_rows, LANE), in_map),
                pl.BlockSpec((block_rows, LANE), in_map),
            ],
            out_specs=pl.BlockSpec((1, SUBLANE, LANE), lambda c, i: (c, 0, 0)),
            scratch_shapes=[pltpu.VMEM((SUBLANE, LANE), jnp.float32)] * 3,
        ),
        compiler_params=pltpu.CompilerParams(
            dimension_semantics=("parallel", "arbitrary")),
    )(x2, t2)

    # Tiny scalar combine of the per-core partials.
    inter = jnp.sum(out[:, 0, 0])
    denom = jnp.sum(out[:, 1, 0])
    bce_sum = jnp.sum(out[:, 2, 0])

    bce_mean = bce_sum / n
    dice_loss = 1.0 - (2.0 * inter + smooth) / (denom + smooth)
    return bce_mean + dice_loss


def _reference(logits, targets, smooth=1.0):
    p = jax.nn.sigmoid(logits.astype(jnp.float32)).reshape(-1)
    t = targets.astype(jnp.float32).reshape(-1)
    inter = jnp.sum(p * t)
    dice = 1.0 - (2.0 * inter + smooth) / (jnp.sum(p) + jnp.sum(t) + smooth)
    bce = jnp.mean(-(t * jnp.maximum(jnp.log(p), -100.0)
                     + (1.0 - t) * jnp.maximum(jnp.log1p(-p), -100.0)))
    return bce + dice


if __name__ == "__main__":
    key = jax.random.PRNGKey(0)
    k1, k2 = jax.random.split(key)
    # NCHW-shaped segmentation logits and binary targets.
    x = jax.random.normal(k1, (2, 4, 16, 16), dtype=jnp.float32)
    tgt = (jax.random.uniform(k2, (2, 4, 16, 16)) > 0.5).astype(jnp.float32)

    loss = dice_bce_loss(x, tgt)
    jax.block_until_ready(loss)

    ref = _reference(x, tgt)
    assert jnp.allclose(loss, ref, atol=1e-4), (loss, ref)
    print("KERNEL_OK")
</pallas_src>

<mosaic_0001>
module attributes {stable_mosaic.version = 11 : i64} {
  func.func @_dice_bce_kernel(%arg0: i32, %arg1: i32, %arg2: memref<16x128xf32, #tpu.memory_space<vmem>>, %arg3: memref<16x128xf32, #tpu.memory_space<vmem>>, %arg4: memref<1x8x128xf32, #tpu.memory_space<vmem>>, %arg5: memref<8x128xf32, #tpu.memory_space<vmem>>, %arg6: memref<8x128xf32, #tpu.memory_space<vmem>>, %arg7: memref<8x128xf32, #tpu.memory_space<vmem>>) attributes {dimension_semantics = [#tpu.dimension_semantics<parallel>, #tpu.dimension_semantics<arbitrary>], iteration_bounds = array<i64: 1, 1>, scalar_prefetch = 0 : i64, scratch_operands = 3 : i64, tpu.core_type = #tpu.core_type<tc>, window_params = [{transform_indices = @transform_0, window_bounds = array<i64: 16, 128>}, {transform_indices = @transform_1, window_bounds = array<i64: 16, 128>}, {transform_indices = @transform_2, window_bounds = array<i64: 1, 8, 128>}]} {
    %c0_i32 = arith.constant 0 : i32
    %0 = arith.cmpi eq, %arg1, %c0_i32 : i32
    %1 = arith.extui %0 : i1 to i32
    %c0_i32_0 = arith.constant 0 : i32
    %2 = arith.cmpi ne, %1, %c0_i32_0 : i32
    scf.if %2 {
      %cst = arith.constant 0.000000e+00 : f32
      %11 = vector.broadcast %cst : f32 to vector<8x128xf32>
      %c0 = arith.constant 0 : index
      %c0_5 = arith.constant 0 : index
      %12 = vector.load %arg5[%c0, %c0_5] : memref<8x128xf32, #tpu.memory_space<vmem>>, vector<8x128xf32>
      tpu.vector_store %arg5[%c0, %c0_5], %11 {strides = array<i32>} : memref<8x128xf32, #tpu.memory_space<vmem>>, vector<8x128xf32>,
      %cst_6 = arith.constant 0.000000e+00 : f32
      %13 = vector.broadcast %cst_6 : f32 to vector<8x128xf32>
      %c0_7 = arith.constant 0 : index
      %c0_8 = arith.constant 0 : index
      %14 = vector.load %arg6[%c0_7, %c0_8] : memref<8x128xf32, #tpu.memory_space<vmem>>, vector<8x128xf32>
      tpu.vector_store %arg6[%c0_7, %c0_8], %13 {strides = array<i32>} : memref<8x128xf32, #tpu.memory_space<vmem>>, vector<8x128xf32>,
      %cst_9 = arith.constant 0.000000e+00 : f32
      %15 = vector.broadcast %cst_9 : f32 to vector<8x128xf32>
      %c0_10 = arith.constant 0 : index
      %c0_11 = arith.constant 0 : index
      %16 = vector.load %arg7[%c0_10, %c0_11] : memref<8x128xf32, #tpu.memory_space<vmem>>, vector<8x128xf32>
      tpu.vector_store %arg7[%c0_10, %c0_11], %15 {strides = array<i32>} : memref<8x128xf32, #tpu.memory_space<vmem>>, vector<8x128xf32>,
    } else {
    }
    %c1_i32 = arith.constant 1 : i32
    %3 = arith.muli %arg0, %c1_i32 : i32
    %4 = arith.addi %3, %arg1 : i32
    %c1_i32_1 = arith.constant 1 : i32
    %5 = arith.cmpi slt, %4, %c1_i32_1 : i32
    %6 = arith.extui %5 : i1 to i32
    %c0_i32_2 = arith.constant 0 : i32
    %7 = arith.cmpi ne, %6, %c0_i32_2 : i32
    scf.if %7 {
      %c0 = arith.constant 0 : index
      %c0_5 = arith.constant 0 : index
      %11 = vector.load %arg2[%c0, %c0_5] : memref<16x128xf32, #tpu.memory_space<vmem>>, vector<16x128xf32>
      %c0_6 = arith.constant 0 : index
      %c0_7 = arith.constant 0 : index
      %12 = vector.load %arg3[%c0_6, %c0_7] : memref<16x128xf32, #tpu.memory_space<vmem>>, vector<16x128xf32>
      %cst = arith.constant 5.000000e-01 : f32
      %13 = vector.broadcast %cst : f32 to vector<16x128xf32>
      %14 = arith.mulf %13, %11 : vector<16x128xf32>
      %15 = math.tanh %14 : vector<16x128xf32>
      %cst_8 = arith.constant 5.000000e-01 : f32
      %16 = vector.broadcast %cst_8 : f32 to vector<16x128xf32>
      %17 = arith.mulf %16, %15 : vector<16x128xf32>
      %cst_9 = arith.constant 5.000000e-01 : f32
      %18 = vector.broadcast %cst_9 : f32 to vector<16x128xf32>
      %19 = arith.addf %17, %18 : vector<16x128xf32>
      %20 = math.log %19 : vector<16x128xf32>
      %cst_10 = arith.constant -1.000000e+02 : f32
      %21 = vector.broadcast %cst_10 : f32 to vector<16x128xf32>
      %22 = arith.maximumf %20, %21 : vector<16x128xf32>
      %23 = arith.subf %22, %11 : vector<16x128xf32>
      %cst_11 = arith.constant -1.000000e+02 : f32
      %cst_12 = arith.constant 0.000000e+00 : f32
      %24 = vector.broadcast %cst_11 : f32 to vector<16x128xf32>
      %25 = arith.maximumf %24, %23 : vector<16x128xf32>
      %26 = vector.broadcast %cst_12 : f32 to vector<16x128xf32>
      %27 = arith.minimumf %26, %25 : vector<16x128xf32>
      %28 = arith.mulf %12, %22 : vector<16x128xf32>
      %cst_13 = arith.constant 1.000000e+00 : f32
      %29 = vector.broadcast %cst_13 : f32 to vector<16x128xf32>
      %30 = arith.subf %29, %12 : vector<16x128xf32>
      %31 = arith.mulf %30, %27 : vector<16x128xf32>
      %32 = arith.addf %28, %31 : vector<16x128xf32>
      %cst_14 = arith.constant 0.000000e+00 : f32
      %33 = vector.broadcast %cst_14 : f32 to vector<16x128xf32>
      %34 = arith.subf %33, %32 : vector<16x128xf32>
      %c0_15 = arith.constant 0 : index
      %c0_16 = arith.constant 0 : index
      %35 = vector.load %arg5[%c0_15, %c0_16] : memref<8x128xf32, #tpu.memory_space<vmem>>, vector<8x128xf32>
      %36 = arith.mulf %19, %12 : vector<16x128xf32>
      %37 = vector.shape_cast %36 : vector<16x128xf32> to vector<2x8x128xf32>
      %cst_17 = arith.constant dense<0.000000e+00> : vector<8x128xf32>
      %38 = vector.multi_reduction <add>, %37, %cst_17 [0] : vector<2x8x128xf32> to vector<8x128xf32>
      %39 = arith.addf %35, %38 : vector<8x128xf32>
      %c0_18 = arith.constant 0 : index
      %c0_19 = arith.constant 0 : index
      %40 = vector.load %arg5[%c0_18, %c0_19] : memref<8x128xf32, #tpu.memory_space<vmem>>, vector<8x128xf32>
      tpu.vector_store %arg5[%c0_18, %c0_19], %39 {strides = array<i32>} : memref<8x128xf32, #tpu.memory_space<vmem>>, vector<8x128xf32>,
      %c0_20 = arith.constant 0 : index
      %c0_21 = arith.constant 0 : index
      %41 = vector.load %arg6[%c0_20, %c0_21] : memref<8x128xf32, #tpu.memory_space<vmem>>, vector<8x128xf32>
      %42 = arith.addf %19, %12 : vector<16x128xf32>
      %43 = vector.shape_cast %42 : vector<16x128xf32> to vector<2x8x128xf32>
      %cst_22 = arith.constant dense<0.000000e+00> : vector<8x128xf32>
      %44 = vector.multi_reduction <add>, %43, %cst_22 [0] : vector<2x8x128xf32> to vector<8x128xf32>
      %45 = arith.addf %41, %44 : vector<8x128xf32>
      %c0_23 = arith.constant 0 : index
      %c0_24 = arith.constant 0 : index
      %46 = vector.load %arg6[%c0_23, %c0_24] : memref<8x128xf32, #tpu.memory_space<vmem>>, vector<8x128xf32>
      tpu.vector_store %arg6[%c0_23, %c0_24], %45 {strides = array<i32>} : memref<8x128xf32, #tpu.memory_space<vmem>>, vector<8x128xf32>,
      %c0_25 = arith.constant 0 : index
      %c0_26 = arith.constant 0 : index
      %47 = vector.load %arg7[%c0_25, %c0_26] : memref<8x128xf32, #tpu.memory_space<vmem>>, vector<8x128xf32>
      %48 = vector.shape_cast %34 : vector<16x128xf32> to vector<2x8x128xf32>
      %cst_27 = arith.constant dense<0.000000e+00> : vector<8x128xf32>
      %49 = vector.multi_reduction <add>, %48, %cst_27 [0] : vector<2x8x128xf32> to vector<8x128xf32>
      %50 = arith.addf %47, %49 : vector<8x128xf32>
      %c0_28 = arith.constant 0 : index
      %c0_29 = arith.constant 0 : index
      %51 = vector.load %arg7[%c0_28, %c0_29] : memref<8x128xf32, #tpu.memory_space<vmem>>, vector<8x128xf32>
      tpu.vector_store %arg7[%c0_28, %c0_29], %50 {strides = array<i32>} : memref<8x128xf32, #tpu.memory_space<vmem>>, vector<8x128xf32>,
    } else {
    }
    %c0_i32_3 = arith.constant 0 : i32
    %8 = arith.cmpi eq, %arg1, %c0_i32_3 : i32
    %9 = arith.extui %8 : i1 to i32
    %c0_i32_4 = arith.constant 0 : i32
    %10 = arith.cmpi ne, %9, %c0_i32_4 : i32
    scf.if %10 {
      %c0 = arith.constant 0 : index
      %c0_5 = arith.constant 0 : index
      %11 = vector.load %arg5[%c0, %c0_5] : memref<8x128xf32, #tpu.memory_space<vmem>>, vector<8x128xf32>
      %12 = vector.shape_cast %11 : vector<8x128xf32> to vector<1x8x128xf32>
      %cst = arith.constant dense<0.000000e+00> : vector<1xf32>
      %13 = vector.multi_reduction <add>, %12, %cst [1, 2] : vector<1x8x128xf32> to vector<1xf32>
      %14 = vector.shape_cast %13 : vector<1xf32> to vector<1x1x1xf32>
      %15 = vector.extract %14[0, 0, 0] : f32 from vector<1x1x1xf32>
      %c0_6 = arith.constant 0 : index
      %c0_7 = arith.constant 0 : index
      %16 = vector.load %arg6[%c0_6, %c0_7] : memref<8x128xf32, #tpu.memory_space<vmem>>, vector<8x128xf32>
      %17 = vector.shape_cast %16 : vector<8x128xf32> to vector<1x8x128xf32>
      %cst_8 = arith.constant dense<0.000000e+00> : vector<1xf32>
      %18 = vector.multi_reduction <add>, %17, %cst_8 [1, 2] : vector<1x8x128xf32> to vector<1xf32>
      %19 = vector.shape_cast %18 : vector<1xf32> to vector<1x1x1xf32>
      %20 = vector.extract %19[0, 0, 0] : f32 from vector<1x1x1xf32>
      %c0_9 = arith.constant 0 : index
      %c0_10 = arith.constant 0 : index
      %21 = vector.load %arg7[%c0_9, %c0_10] : memref<8x128xf32, #tpu.memory_space<vmem>>, vector<8x128xf32>
      %22 = vector.shape_cast %21 : vector<8x128xf32> to vector<1x8x128xf32>
      %cst_11 = arith.constant dense<0.000000e+00> : vector<1xf32>
      %23 = vector.multi_reduction <add>, %22, %cst_11 [1, 2] : vector<1x8x128xf32> to vector<1xf32>
      %24 = vector.shape_cast %23 : vector<1xf32> to vector<1x1x1xf32>
      %25 = vector.extract %24[0, 0, 0] : f32 from vector<1x1x1xf32>
      %26 = tpu.iota {dimensions = array<i32: 0>} : vector<8x128xi32>
      %c0_i32_12 = arith.constant 0 : i32
      %27 = vector.broadcast %c0_i32_12 : i32 to vector<8x128xi32>
      %28 = arith.cmpi eq, %26, %27 : vector<8x128xi32>
      %c1_i32_13 = arith.constant 1 : i32
      %29 = vector.broadcast %c1_i32_13 : i32 to vector<8x128xi32>
      %30 = arith.cmpi eq, %26, %29 : vector<8x128xi32>
      %c2_i32 = arith.constant 2 : i32
      %31 = vector.broadcast %c2_i32 : i32 to vector<8x128xi32>
      %32 = arith.cmpi eq, %26, %31 : vector<8x128xi32>
      %cst_14 = arith.constant 0.000000e+00 : f32
      %33 = vector.broadcast %25 : f32 to vector<8x128xf32>
      %34 = vector.broadcast %cst_14 : f32 to vector<8x128xf32>
      %35 = arith.select %32, %33, %34 : vector<8x128xi1>, vector<8x128xf32>
      %36 = vector.broadcast %20 : f32 to vector<8x128xf32>
      %37 = arith.select %30, %36, %35 : vector<8x128xi1>, vector<8x128xf32>
      %38 = vector.broadcast %15 : f32 to vector<8x128xf32>
      %39 = arith.select %28, %38, %37 : vector<8x128xi1>, vector<8x128xf32>
      %40 = vector.shape_cast %39 : vector<8x128xf32> to vector<1x8x128xf32>
      %c0_15 = arith.constant 0 : index
      %c0_16 = arith.constant 0 : index
      %c0_17 = arith.constant 0 : index
      %41 = vector.load %arg4[%c0_15, %c0_16, %c0_17] : memref<1x8x128xf32, #tpu.memory_space<vmem>>, vector<1x8x128xf32>
      tpu.vector_store %arg4[%c0_15, %c0_16, %c0_17], %40 {strides = array<i32>} : memref<1x8x128xf32, #tpu.memory_space<vmem>>, vector<1x8x128xf32>,
    } else {
    }
    return
  }
  func.func @transform_0(%arg0: i32, %arg1: i32) -> (i32, i32) {
    %c1_i32 = arith.constant 1 : i32
    %0 = arith.muli %arg0, %c1_i32 : i32
    %1 = arith.addi %0, %arg1 : i32
    %c0_i32 = arith.constant 0 : i32
    %2 = arith.minsi %1, %c0_i32 : i32
    %c0_i32_0 = arith.constant 0 : i32
    %c0_i32_1 = arith.constant 0 : i32
    return %2, %c0_i32_0 : i32, i32
  }
  func.func @transform_1(%arg0: i32, %arg1: i32) -> (i32, i32) {
    %c1_i32 = arith.constant 1 : i32
    %0 = arith.muli %arg0, %c1_i32 : i32
    %1 = arith.addi %0, %arg1 : i32
    %c0_i32 = arith.constant 0 : i32
    %2 = arith.minsi %1, %c0_i32 : i32
    %c0_i32_0 = arith.constant 0 : i32
    %c0_i32_1 = arith.constant 0 : i32
    return %2, %c0_i32_0 : i32, i32
  }
  func.func @transform_2(%arg0: i32, %arg1: i32) -> (i32, i32, i32) {
    %c0_i32 = arith.constant 0 : i32
    %c0_i32_0 = arith.constant 0 : i32
    %c0_i32_1 = arith.constant 0 : i32
    return %arg0, %c0_i32, %c0_i32_0 : i32, i32, i32
  }
}

</mosaic_0001>

<bundles_post_ra>
// kernel: tpu_custom_call.1
= control target key start
LH: loop header
LB: loop body
LE: loop exit
PB: predicated region body
PF: predicated region fallthrough
CT: control target
= control target key end

     0   :  { %7 = vsyncpa [#allocation6], 0  ;;  %s319_s0 = inlined_call_operand.hbm [shape: f32[16,128], index: 0, kind: input, shape index: {}]   ;;  %s320_s1 = inlined_call_operand.hbm [shape: f32[16,128], index: 1, kind: input, shape index: {}]   ;;  %s321_s2 = inlined_call_operand.hbm [shape: f32[1,8,128], index: 2, kind: output, shape index: {}]  }
   0x1   :  { %8 = vsyncpa [#allocation9], 0 }
   0x2   :  { %9 = vsyncpa [#allocation7], 0  ;;  %s20_s11 = sshll.u32 %s319_s0, 4  ;;  %s290_s12 = smov [#allocation5]   ;;  %s21_s11 = int_to_ptr.hbm [resolvable:$true] %s20_s11 }
   0x3   :  { %s22_s13 = sshll.u32 %s290_s12, 4  ;;  %s39_s16 = sshll.u32 %s320_s1, 4  ;;  %s23_s13 = int_to_ptr.vmem [resolvable:$true] %s22_s13  ;;  %s40_s16 = int_to_ptr.hbm [resolvable:$true] %s39_s16 }
   0x4   :  { %s291_s17 = smov 128   ;;  %s292_s18 = smov 8  }
   0x5   :  { %28 = dma.hbm_to_vmem [thread:$0]  %s21_s11, 256, %s23_s13, [#allocation6], %s291_s17, %s291_s17, %s292_s18  }
   0x6   :  { %s293_s19 = smov [#allocation8]  }
   0x7   :  { %s41_s20 = sshll.u32 %s293_s19, 4  ;;  %s42_s20 = int_to_ptr.vmem [resolvable:$true] %s41_s20 }
   0x8   :  { %47 = dma.hbm_to_vmem [thread:$0]  %s40_s16, 256, %s42_s20, [#allocation9], %s291_s17, %s291_s17, %s292_s18  }
   0x9   :  { %284 = dma.done.wait [#allocation6], 256  }
   0xa   :  { %285 = vsyncadd [#allocation6], 4294967040 }
   0xb   :  { %286 = dma.done.wait [#allocation9], 256  }
   0xc   :  { %287 = vsyncadd [#allocation9], 4294967040  ;;  %v76_v0 = vld [vmem:[#allocation5] sm:$0xff]  ;;  %v77_v1 = vld [vmem:[#allocation5 + $0x8] sm:$0xff]  ;;  %v159_v62 = vlaneseq  ;;  %s294_s21 = smov [#allocation10]   ;;  %s178_s26 = sshll.u32 %s321_s2, 4  ;;  %s179_s26 = int_to_ptr.hbm [resolvable:$true] %s178_s26 }
   0xd   :  { %v80_v2 = vmul.f32 0.5, %v76_v0  ;;  %v81_v3 = vmul.f32 0.5, %v77_v1  ;;  %v78_v7 = vld [vmem:[#allocation8] sm:$0xff]  ;;  %v79_v9 = vld [vmem:[#allocation8 + $0x8] sm:$0xff]  ;;  %s176_s22 = sshll.u32 %s294_s21, 4  ;;  %s177_s22 = int_to_ptr.vmem [resolvable:$true] %s176_s22 }
   0xe   :  { %v102_v27 = vsub.f32 1.0, %v78_v7  ;;  %v103_v29 = vsub.f32 1.0, %v79_v9  ;;  %v160_v63 = vshrl.u32 %v159_v62, 7 }
   0xf   :  { %204 = vtanh.f32 %v80_v2 }
  0x10   :  { %206 = vtanh.f32 %v81_v3  ;;  %vm163_vm0 = vcmp.eq.s32.totalorder %v160_v63, 2  ;;  %vm162_vm1 = vcmp.eq.s32.totalorder %v160_v63, 1  ;;  %vm161_vm2 = vcmp.eq.s32.totalorder %v160_v63, 0 }
  0x15   :  { %v205_v4 = vpop.eup %204 }
  0x16   :  { %v207_v5 = vpop.eup %206  ;;  %v84_v6 = vmul.f32 0.5, %v205_v4 }
  0x17   :  { %v85_v8 = vmul.f32 0.5, %v207_v5 }
  0x18   :  { %v86_v10 = vadd.f32 0.5, %v84_v6 }
  0x19   :  { %v87_v11 = vadd.f32 0.5, %v85_v8 }
  0x1a   :  { %v111_v12 = vmul.f32 %v86_v10, %v78_v7  ;;  %208 = vlog2.f32 %v86_v10  ;;  %v117_v15 = vadd.f32 %v86_v10, %v78_v7 }
  0x1b   :  { %v112_v13 = vmul.f32 %v87_v11, %v79_v9  ;;  %210 = vlog2.f32 %v87_v11  ;;  %v118_v16 = vadd.f32 %v87_v11, %v79_v9 }
  0x1d   :  { %v113_v14 = vadd.f32 %v112_v13, %v111_v12  ;;  %v119_v21 = vadd.f32 %v118_v16, %v117_v15 }
  0x1f   :  { %130 = vadd.xlane.f32.xlu0 %v113_v14 }
  0x20   :  { %v209_v17 = vpop.eup %208 }
  0x21   :  { %v211_v18 = vpop.eup %210  ;;  %v89_v19 = vmul.f32 0.6931472, %v209_v17 }
  0x22   :  { %v91_v20 = vmul.f32 0.6931472, %v211_v18 }
  0x23   :  { %v92_v22 = vmax.f32 %v89_v19, -100.0 }
  0x24   :  { %v93_v23 = vmax.f32 %v91_v20, -100.0 }
  0x25   :  { %v94_v24 = vsub.f32 %v92_v22, %v76_v0  ;;  %v100_v31 = vmul.f32 %v92_v22, %v78_v7 }
  0x26   :  { %v95_v25 = vsub.f32 %v93_v23, %v77_v1  ;;  %v101_v33 = vmul.f32 %v93_v23, %v79_v9 }
  0x27   :  { %140 = vadd.xlane.f32.xlu0 %v119_v21  ;;  %v96_v26 = vmax.f32 %v94_v24, -100.0 }
  0x28   :  { %v97_v28 = vmax.f32 %v95_v25, -100.0 }
  0x29   :  { %v98_v30 = vmin.f32 %v96_v26, 0.0 }
  0x2a   :  { %v99_v32 = vmin.f32 %v97_v28, 0.0 }
  0x2b   :  { %v104_v34 = vmul.f32 %v102_v27, %v98_v30 }
  0x2c   :  { %v105_v35 = vmul.f32 %v103_v29, %v99_v32 }
  0x2d   :  { %v106_v36 = vadd.f32 %v104_v34, %v100_v31 }
  0x2e   :  { %v107_v37 = vadd.f32 %v105_v35, %v101_v33 }
  0x2f   :  { %v108_v38 = vsub.f32 0.0, %v106_v36 }
  0x30   :  { %v109_v39 = vsub.f32 0.0, %v107_v37 }
  0x32   :  { %v123_v40 = vadd.f32 %v109_v39, %v108_v38 }
  0x34   :  { %150 = vadd.xlane.f32.xlu1 %v123_v40 }
  0x92   :  { %v131_v41 = vpop.xlane.xlu0 %130 }
  0x93   :  { %v132_v42 = vrot.slane %v131_v41, 4 }
  0x95   :  { %v133_v43 = vadd.f32 %v132_v42, %v131_v41 }
  0x97   :  { %v134_v44 = vrot.slane %v133_v43, 2 }
  0x99   :  { %v135_v45 = vadd.f32 %v134_v44, %v133_v43 }
  0x9a   :  { %v141_v46 = vpop.xlane.xlu0 %140 }
  0x9b   :  { %v142_v47 = vrot.slane %v141_v46, 4  ;;  %v136_v48 = vrot.slane %v135_v45, 1 }
  0x9d   :  { %v143_v49 = vadd.f32 %v142_v47, %v141_v46  ;;  %v137_v50 = vadd.f32 %v136_v48, %v135_v45 }
  0x9f   :  { %v144_v51 = vrot.slane %v143_v49, 2  ;;  %193 = vpush %v137_v50 }
  0xa1   :  { %v145_v52 = vadd.f32 %v144_v51, %v143_v49 }
  0xa3   :  { %v146_v53 = vrot.slane %v145_v52, 1 }
  0xa5   :  { %v147_v54 = vadd.f32 %v146_v53, %v145_v52 }
  0xa7   :  { %v151_v55 = vpop.xlane.xlu1 %150  ;;  %195 = vpush %v147_v54 }
  0xa8   :  { %v152_v56 = vrot.slane %v151_v55, 4 }
  0xaa   :  { %v153_v57 = vadd.f32 %v152_v56, %v151_v55 }
  0xac   :  { %v154_v58 = vrot.slane %v153_v57, 2 }
  0xae   :  { %v155_v59 = vadd.f32 %v154_v58, %v153_v57 }
  0xb0   :  { %v156_v60 = vrot.slane %v155_v59, 1 }
  0xb2   :  { %v157_v61 = vadd.f32 %v156_v60, %v155_v59 }
  0xb4   :  { %197 = vpush %v157_v61 }
  0xd0   :  { %s194_s0 = spop %193 }
  0xd1   :  { %v168_v3 = vstv %s194_s0 }
  0xd8   :  { %s196_s1 = spop %195 }
  0xd9   :  { %v166_v1 = vstv %s196_s1 }
  0xe5   :  { %s198_s23 = spop %197 }
  0xe6   :  { %v164_v0 = vstv %s198_s23 }
  0xe7   :  { %v165_v2 = vsel %vm163_vm0, %v164_v0, 0.0 }
  0xe8   :  { %v167_v4 = vsel %vm162_vm1, %v166_v1, %v165_v2 }
  0xe9   :  { %v169_v5 = vsel %vm161_vm2, %v168_v3, %v167_v4 }
  0xea   :  { %170 = vst [vmem:[#allocation10] sm:$0xff] %v169_v5 }
  0xeb   :  { %181 = dma.vmem_to_hbm [thread:$0]  %s177_s22, 128, %s179_s26, [#allocation7]  }
  0xec   :  { %288 = dma.done.wait [#allocation7], 128  }
  0xed   :  { %289 = vsyncadd [#allocation7], 4294967168 }
  0xee   :  { %186 = vsyncpa [#allocation6], 1 }
  0xef   :  { %187 = vsyncpa [#allocation9], 1 }
  0xf0   :  { %188 = vsyncpa [#allocation7], 1 }

</bundles_post_ra>
